<compile_context>
chip_gen: v7x
topology: tpu7x:2x2x1
jax: 0.10.0
libtpu: 0.0.40
codegen_flags: <defaults>
</compile_context>

<pallas_src>
import jax
import jax.numpy as jnp
from jax.experimental import pallas as pl
from jax.experimental.pallas import tpu as pltpu


def doc_embed_kernel(alpha_ref, idx_ref, lang_ref, t1_ref, w2_ref, out_ref):
    tb, n_tok = idx_ref.shape
    V = t1_ref.shape[0]        # merged vocab, lane-padded
    KP = t1_ref.shape[1]       # padded hidden width (D_toks + lang_vocab -> 128)

    # 2-D accumulated one-hot counts over the merged (break|caps|text) vocab.
    # A single iota is hoisted and reused; no (tb, S, V) 3-D temporary.
    iota = jax.lax.broadcasted_iota(jnp.int32, (tb, V), 1)
    idx = idx_ref[...]                                   # (tb, 3*S) int32
    counts = jnp.zeros((tb, V), jnp.float32)
    for s in range(n_tok):                               # static, unrolled at trace time
        counts = counts + (idx[:, s:s + 1] == iota).astype(jnp.float32)

    # toks_layer: tables pre-folded with W_toks (b_toks folded into break block).
    h = jnp.dot(counts, t1_ref[...], preferred_element_type=jnp.float32)   # (tb, KP)

    # PReLU with a single shared slope (scalar read from SMEM). Padded lanes stay 0.
    a = alpha_ref[0]
    h = jnp.where(h > 0, h, a * h)

    # phrase_dropout(p=0.5): identity in eval mode.
    # TODO(synk): training-mode dropout needs pltpu.prng_seed / prng_random_bits.

    # Language gather in-kernel: one-hot dropped into lanes [D_toks, D_toks+lang_vocab)
    # of the padded hidden (wrapper pre-offset the language index by D_toks).
    iota2 = iota if KP == V else jax.lax.broadcasted_iota(jnp.int32, (tb, KP), 1)
    phi = h + (lang_ref[...] == iota2).astype(jnp.float32)

    # docs_layer: [w_dt ; lang_embed@w_dl + b_docs ; 0] stacked into one K=KP weight,
    # zero-padded to 128 output lanes so the store is lane-dense (unmasked vst).
    out = jnp.dot(phi, w2_ref[...], preferred_element_type=jnp.float32)
    out_ref[...] = out.astype(out_ref.dtype)


def _pick_tile(B, block_b):
    """Rows per grid step (always a multiple of 8 sublanes)."""
    B8 = 8 * pl.cdiv(max(B, 1), 8)
    if B8 >= 2 * block_b:
        return block_b                     # large batch: many full-size tiles
    if B8 >= 256:
        return 8 * pl.cdiv(B8, 16)         # medium batch: exactly 2 steps (v7x megacore)
    return B8                              # small batch: single step, zero extra overhead


def doc_embedding_forward(params, lang_inputs, toks_inputs, *, block_b=512):
    """lang_inputs: (B, 1) int32; toks_inputs: (3, B, S) int32 -> (B, embed_size) f32."""
    B, S = toks_inputs.shape[1], toks_inputs.shape[2]
    lang_idx = lang_inputs[:, 0]           # NOT squeeze(): that breaks when B == 1

    n_break, D_brk = params["break_embed"].shape
    n_caps, D_cap = params["caps_embed"].shape
    text_vocab, _ = params["text_embed"].shape
    lang_vocab, D_lang = params["lang_embed"].shape
    D_toks = params["w_toks"].shape[1]
    D_emb = params["w_docs"].shape[1]

    # ---- constant, batch-independent weight folding (trace-time only) ----
    w_toks = params["w_toks"]
    brk_proj = params["break_embed"] @ w_toks[:D_brk] + params["b_toks"][None]  # b_toks folded
    cap_proj = params["caps_embed"] @ w_toks[D_brk:D_brk + D_cap]
    txt_proj = params["text_embed"] @ w_toks[D_brk + D_cap:]
    comb = jnp.concatenate([brk_proj, cap_proj, txt_proj], axis=0)              # (n_comb, D_toks)
    n_comb = comb.shape[0]

    V = 128 * pl.cdiv(n_comb, 128)                   # merged vocab padded to lanes
    KP = 128 * pl.cdiv(D_toks + lang_vocab, 128)     # padded hidden width
    DP = 128 * pl.cdiv(D_emb, 128)                   # lane-dense output width

    t1 = jnp.zeros((V, KP), jnp.float32).at[:n_comb, :D_toks].set(comb)

    w_dl = params["w_docs"][:D_lang]
    w_dt = params["w_docs"][D_lang:]
    lang_docs = params["lang_embed"] @ w_dl + params["b_docs"][None]            # (lang_vocab, D_emb)
    w2 = jnp.zeros((KP, DP), jnp.float32)
    w2 = w2.at[:D_toks, :D_emb].set(w_dt)
    w2 = w2.at[D_toks:D_toks + lang_vocab, :D_emb].set(lang_docs)

    # ---- per-call data: only int32 index streams, no f32 feature materialization ----
    comb_idx = jnp.concatenate(
        [toks_inputs[0],
         toks_inputs[1] + n_break,
         toks_inputs[2] + n_break + n_caps], axis=1).astype(jnp.int32)          # (B, 3*S)
    # TODO(synk): stream comb_idx as int8/int16 (merged vocab fits) once truly
    # HBM-bound at large B; int32 kept for layout robustness across generations.
    lang_col = (lang_idx + D_toks).astype(jnp.int32)[:, None]                   # (B, 1)

    TB = _pick_tile(B, block_b)
    B_pad = TB * pl.cdiv(B, TB)
    pad_b = B_pad - B
    comb_idx = jnp.pad(comb_idx, ((0, pad_b), (0, 0)))
    lang_col = jnp.pad(lang_col, ((0, pad_b), (0, 0)), constant_values=D_toks)

    n_tok = comb_idx.shape[1]
    grid = (B_pad // TB,)
    idx_spec = pl.BlockSpec((TB, n_tok), lambda i: (i, 0))
    lang_spec = pl.BlockSpec((TB, 1), lambda i: (i, 0))
    out_spec = pl.BlockSpec((TB, DP), lambda i: (i, 0))
    vmem = pl.BlockSpec(memory_space=pltpu.MemorySpace.VMEM)   # small, VMEM-resident weights
    smem = pl.BlockSpec(memory_space=pltpu.MemorySpace.SMEM)   # PReLU slope scalar

    cost = pl.CostEstimate(
        flops=2 * B_pad * (V * KP + KP * DP) + B_pad * n_tok * V,
        transcendentals=0,
        bytes_accessed=(B_pad * n_tok * 4          # merged int32 token indices
                        + B_pad * 4                # language indices
                        + B_pad * DP * 4           # lane-dense f32 output
                        + 4 * (V * KP + KP * DP) + 4),
    )

    out = pl.pallas_call(
        doc_embed_kernel,
        out_shape=jax.ShapeDtypeStruct((B_pad, DP), jnp.float32),
        grid=grid,
        in_specs=[smem, idx_spec, lang_spec, vmem, vmem],
        out_specs=out_spec,
        compiler_params=pltpu.CompilerParams(
            dimension_semantics=("parallel",),      # batch tiles split across v7x's 2 TCs
            vmem_limit_bytes=32 * 1024 * 1024),     # plenty for TB<=512; safe on v5e/v6e/v7x
        cost_estimate=cost,
    )(params["alpha"], comb_idx, lang_col, t1, w2)

    return out[:B, :D_emb]


def _renorm_rows(table, max_norm=1.0, eps=1e-7):
    # torch Embedding(max_norm=1.0): rows with L2-norm > 1 are renormalized.
    n = jnp.linalg.norm(table, axis=1, keepdims=True)
    return table * jnp.minimum(1.0, max_norm / (n + eps))


def make_params(key, *, lang_vocab=5, n_break=4, n_caps=3, text_vocab=50,
                lang_embed=8, break_embed=8, caps_embed=8, text_embed=16,
                toks_embed=32, embed_size=32):
    ks = jax.random.split(key, 9)
    d_in = break_embed + caps_embed + text_embed
    lang_t = _renorm_rows(jax.random.normal(ks[0], (lang_vocab, lang_embed), jnp.float32))
    brk_t = _renorm_rows(jax.random.normal(ks[1], (n_break, break_embed), jnp.float32))
    cap_t = _renorm_rows(jax.random.normal(ks[2], (n_caps, caps_embed), jnp.float32))
    txt_t = _renorm_rows(jax.random.normal(ks[3], (text_vocab, text_embed), jnp.float32))
    txt_t = txt_t.at[0].set(0.0)  # padding_idx=0
    return dict(
        lang_embed=lang_t, break_embed=brk_t, caps_embed=cap_t, text_embed=txt_t,
        w_toks=jax.random.normal(ks[4], (d_in, toks_embed), jnp.float32) * 0.1,
        b_toks=jax.random.normal(ks[5], (toks_embed,), jnp.float32) * 0.1,
        w_docs=jax.random.normal(ks[6], (lang_embed + toks_embed, embed_size), jnp.float32) * 0.1,
        b_docs=jax.random.normal(ks[7], (embed_size,), jnp.float32) * 0.1,
        alpha=jnp.array([0.25], jnp.float32),  # PReLU default init
    )


def reference_forward(params, lang_inputs, toks_inputs):
    brk = params["break_embed"][toks_inputs[0]]
    cap = params["caps_embed"][toks_inputs[1]]
    txt = params["text_embed"][toks_inputs[2]]
    toks_input = jnp.concatenate([brk, cap, txt], axis=2)
    toks_embed = toks_input @ params["w_toks"] + params["b_toks"]
    phrase = toks_embed.sum(axis=-2)
    a = params["alpha"][0]
    phrase = jnp.where(phrase > 0, phrase, a * phrase)
    lang = params["lang_embed"][lang_inputs[:, 0]]
    docs_input = jnp.concatenate([lang, phrase], axis=1)
    return docs_input @ params["w_docs"] + params["b_docs"]


if __name__ == "__main__":
    key = jax.random.PRNGKey(0)
    kp, k1, k2, k3, k4 = jax.random.split(key, 5)

    B, S = 16, 8
    params = make_params(kp)

    lang_inputs = jax.random.randint(k1, (B, 1), 0, params["lang_embed"].shape[0], jnp.int32)
    brk_idx = jax.random.randint(k2, (B, S), 0, params["break_embed"].shape[0], jnp.int32)
    cap_idx = jax.random.randint(k3, (B, S), 0, params["caps_embed"].shape[0], jnp.int32)
    txt_idx = jax.random.randint(k4, (B, S), 0, params["text_embed"].shape[0], jnp.int32)
    toks_inputs = jnp.stack([brk_idx, cap_idx, txt_idx], axis=0)  # (3, B, S)

    out = doc_embedding_forward(params, lang_inputs, toks_inputs)
    out = jax.block_until_ready(out)

    ref = reference_forward(params, lang_inputs, toks_inputs)
    assert out.shape == (B, params["w_docs"].shape[1])
    assert jnp.allclose(out, ref, atol=1e-4, rtol=1e-4), "mismatch vs JAX reference"

    print("KERNEL_OK")
</pallas_src>

<mosaic_0001>
module attributes {stable_mosaic.version = 11 : i64} {
  func.func @doc_embed_kernel(%arg0: i32, %arg1: memref<1xf32, #tpu.memory_space<smem>>, %arg2: memref<16x24xi32, #tpu.memory_space<vmem>>, %arg3: memref<16x1xi32, #tpu.memory_space<vmem>>, %arg4: memref<128x128xf32, #tpu.memory_space<vmem>>, %arg5: memref<128x128xf32, #tpu.memory_space<vmem>>, %arg6: memref<16x128xf32, #tpu.memory_space<vmem>>) attributes {dimension_semantics = [#tpu.dimension_semantics<parallel>], iteration_bounds = array<i64: 1>, scalar_prefetch = 0 : i64, scratch_operands = 0 : i64, tpu.core_type = #tpu.core_type<tc>, window_params = [{transform_indices = @transform_0, window_bounds = array<i64: 1>}, {transform_indices = @transform_1, window_bounds = array<i64: 16, 24>}, {transform_indices = @transform_2, window_bounds = array<i64: 16, 1>}, {pipeline_mode = #tpu.pipeline_mode<synchronous>, transform_indices = @transform_3, window_bounds = array<i64: 128, 128>}, {pipeline_mode = #tpu.pipeline_mode<synchronous>, transform_indices = @transform_4, window_bounds = array<i64: 128, 128>}, {transform_indices = @transform_5, window_bounds = array<i64: 16, 128>}]} {
    %0 = tpu.iota {dimensions = array<i32: 1>} : vector<16x128xi32>
    %c0 = arith.constant 0 : index
    %c0_0 = arith.constant 0 : index
    %1 = vector.load %arg2[%c0, %c0_0] : memref<16x24xi32, #tpu.memory_space<vmem>>, vector<16x24xi32>
    %cst = arith.constant 0.000000e+00 : f32
    %2 = vector.broadcast %cst : f32 to vector<16x128xf32>
    %3 = vector.extract_strided_slice %1 {offsets = [0, 0], sizes = [16, 1], strides = [1, 1]} : vector<16x24xi32> to vector<16x1xi32>
    %4 = vector.broadcast %3 : vector<16x1xi32> to vector<16x128xi32>
    %5 = arith.cmpi eq, %4, %0 : vector<16x128xi32>
    %6 = arith.extui %5 : vector<16x128xi1> to vector<16x128xi32>
    %7 = arith.sitofp %6 : vector<16x128xi32> to vector<16x128xf32>
    %8 = arith.addf %2, %7 : vector<16x128xf32>
    %9 = vector.extract_strided_slice %1 {offsets = [0, 1], sizes = [16, 1], strides = [1, 1]} : vector<16x24xi32> to vector<16x1xi32>
    %10 = vector.broadcast %9 : vector<16x1xi32> to vector<16x128xi32>
    %11 = arith.cmpi eq, %10, %0 : vector<16x128xi32>
    %12 = arith.extui %11 : vector<16x128xi1> to vector<16x128xi32>
    %13 = arith.sitofp %12 : vector<16x128xi32> to vector<16x128xf32>
    %14 = arith.addf %8, %13 : vector<16x128xf32>
    %15 = vector.extract_strided_slice %1 {offsets = [0, 2], sizes = [16, 1], strides = [1, 1]} : vector<16x24xi32> to vector<16x1xi32>
    %16 = vector.broadcast %15 : vector<16x1xi32> to vector<16x128xi32>
    %17 = arith.cmpi eq, %16, %0 : vector<16x128xi32>
    %18 = arith.extui %17 : vector<16x128xi1> to vector<16x128xi32>
    %19 = arith.sitofp %18 : vector<16x128xi32> to vector<16x128xf32>
    %20 = arith.addf %14, %19 : vector<16x128xf32>
    %21 = vector.extract_strided_slice %1 {offsets = [0, 3], sizes = [16, 1], strides = [1, 1]} : vector<16x24xi32> to vector<16x1xi32>
    %22 = vector.broadcast %21 : vector<16x1xi32> to vector<16x128xi32>
    %23 = arith.cmpi eq, %22, %0 : vector<16x128xi32>
    %24 = arith.extui %23 : vector<16x128xi1> to vector<16x128xi32>
    %25 = arith.sitofp %24 : vector<16x128xi32> to vector<16x128xf32>
    %26 = arith.addf %20, %25 : vector<16x128xf32>
    %27 = vector.extract_strided_slice %1 {offsets = [0, 4], sizes = [16, 1], strides = [1, 1]} : vector<16x24xi32> to vector<16x1xi32>
    %28 = vector.broadcast %27 : vector<16x1xi32> to vector<16x128xi32>
    %29 = arith.cmpi eq, %28, %0 : vector<16x128xi32>
    %30 = arith.extui %29 : vector<16x128xi1> to vector<16x128xi32>
    %31 = arith.sitofp %30 : vector<16x128xi32> to vector<16x128xf32>
    %32 = arith.addf %26, %31 : vector<16x128xf32>
    %33 = vector.extract_strided_slice %1 {offsets = [0, 5], sizes = [16, 1], strides = [1, 1]} : vector<16x24xi32> to vector<16x1xi32>
    %34 = vector.broadcast %33 : vector<16x1xi32> to vector<16x128xi32>
    %35 = arith.cmpi eq, %34, %0 : vector<16x128xi32>
    %36 = arith.extui %35 : vector<16x128xi1> to vector<16x128xi32>
    %37 = arith.sitofp %36 : vector<16x128xi32> to vector<16x128xf32>
    %38 = arith.addf %32, %37 : vector<16x128xf32>
    %39 = vector.extract_strided_slice %1 {offsets = [0, 6], sizes = [16, 1], strides = [1, 1]} : vector<16x24xi32> to vector<16x1xi32>
    %40 = vector.broadcast %39 : vector<16x1xi32> to vector<16x128xi32>
    %41 = arith.cmpi eq, %40, %0 : vector<16x128xi32>
    %42 = arith.extui %41 : vector<16x128xi1> to vector<16x128xi32>
    %43 = arith.sitofp %42 : vector<16x128xi32> to vector<16x128xf32>
    %44 = arith.addf %38, %43 : vector<16x128xf32>
    %45 = vector.extract_strided_slice %1 {offsets = [0, 7], sizes = [16, 1], strides = [1, 1]} : vector<16x24xi32> to vector<16x1xi32>
    %46 = vector.broadcast %45 : vector<16x1xi32> to vector<16x128xi32>
    %47 = arith.cmpi eq, %46, %0 : vector<16x128xi32>
    %48 = arith.extui %47 : vector<16x128xi1> to vector<16x128xi32>
    %49 = arith.sitofp %48 : vector<16x128xi32> to vector<16x128xf32>
    %50 = arith.addf %44, %49 : vector<16x128xf32>
    %51 = vector.extract_strided_slice %1 {offsets = [0, 8], sizes = [16, 1], strides = [1, 1]} : vector<16x24xi32> to vector<16x1xi32>
    %52 = vector.broadcast %51 : vector<16x1xi32> to vector<16x128xi32>
    %53 = arith.cmpi eq, %52, %0 : vector<16x128xi32>
    %54 = arith.extui %53 : vector<16x128xi1> to vector<16x128xi32>
    %55 = arith.sitofp %54 : vector<16x128xi32> to vector<16x128xf32>
    %56 = arith.addf %50, %55 : vector<16x128xf32>
    %57 = vector.extract_strided_slice %1 {offsets = [0, 9], sizes = [16, 1], strides = [1, 1]} : vector<16x24xi32> to vector<16x1xi32>
    %58 = vector.broadcast %57 : vector<16x1xi32> to vector<16x128xi32>
    %59 = arith.cmpi eq, %58, %0 : vector<16x128xi32>
    %60 = arith.extui %59 : vector<16x128xi1> to vector<16x128xi32>
    %61 = arith.sitofp %60 : vector<16x128xi32> to vector<16x128xf32>
    %62 = arith.addf %56, %61 : vector<16x128xf32>
    %63 = vector.extract_strided_slice %1 {offsets = [0, 10], sizes = [16, 1], strides = [1, 1]} : vector<16x24xi32> to vector<16x1xi32>
    %64 = vector.broadcast %63 : vector<16x1xi32> to vector<16x128xi32>
    %65 = arith.cmpi eq, %64, %0 : vector<16x128xi32>
    %66 = arith.extui %65 : vector<16x128xi1> to vector<16x128xi32>
    %67 = arith.sitofp %66 : vector<16x128xi32> to vector<16x128xf32>
    %68 = arith.addf %62, %67 : vector<16x128xf32>
    %69 = vector.extract_strided_slice %1 {offsets = [0, 11], sizes = [16, 1], strides = [1, 1]} : vector<16x24xi32> to vector<16x1xi32>
    %70 = vector.broadcast %69 : vector<16x1xi32> to vector<16x128xi32>
    %71 = arith.cmpi eq, %70, %0 : vector<16x128xi32>
    %72 = arith.extui %71 : vector<16x128xi1> to vector<16x128xi32>
    %73 = arith.sitofp %72 : vector<16x128xi32> to vector<16x128xf32>
    %74 = arith.addf %68, %73 : vector<16x128xf32>
    %75 = vector.extract_strided_slice %1 {offsets = [0, 12], sizes = [16, 1], strides = [1, 1]} : vector<16x24xi32> to vector<16x1xi32>
    %76 = vector.broadcast %75 : vector<16x1xi32> to vector<16x128xi32>
    %77 = arith.cmpi eq, %76, %0 : vector<16x128xi32>
    %78 = arith.extui %77 : vector<16x128xi1> to vector<16x128xi32>
    %79 = arith.sitofp %78 : vector<16x128xi32> to vector<16x128xf32>
    %80 = arith.addf %74, %79 : vector<16x128xf32>
    %81 = vector.extract_strided_slice %1 {offsets = [0, 13], sizes = [16, 1], strides = [1, 1]} : vector<16x24xi32> to vector<16x1xi32>
    %82 = vector.broadcast %81 : vector<16x1xi32> to vector<16x128xi32>
    %83 = arith.cmpi eq, %82, %0 : vector<16x128xi32>
    %84 = arith.extui %83 : vector<16x128xi1> to vector<16x128xi32>
    %85 = arith.sitofp %84 : vector<16x128xi32> to vector<16x128xf32>
    %86 = arith.addf %80, %85 : vector<16x128xf32>
    %87 = vector.extract_strided_slice %1 {offsets = [0, 14], sizes = [16, 1], strides = [1, 1]} : vector<16x24xi32> to vector<16x1xi32>
    %88 = vector.broadcast %87 : vector<16x1xi32> to vector<16x128xi32>
    %89 = arith.cmpi eq, %88, %0 : vector<16x128xi32>
    %90 = arith.extui %89 : vector<16x128xi1> to vector<16x128xi32>
    %91 = arith.sitofp %90 : vector<16x128xi32> to vector<16x128xf32>
    %92 = arith.addf %86, %91 : vector<16x128xf32>
    %93 = vector.extract_strided_slice %1 {offsets = [0, 15], sizes = [16, 1], strides = [1, 1]} : vector<16x24xi32> to vector<16x1xi32>
    %94 = vector.broadcast %93 : vector<16x1xi32> to vector<16x128xi32>
    %95 = arith.cmpi eq, %94, %0 : vector<16x128xi32>
    %96 = arith.extui %95 : vector<16x128xi1> to vector<16x128xi32>
    %97 = arith.sitofp %96 : vector<16x128xi32> to vector<16x128xf32>
    %98 = arith.addf %92, %97 : vector<16x128xf32>
    %99 = vector.extract_strided_slice %1 {offsets = [0, 16], sizes = [16, 1], strides = [1, 1]} : vector<16x24xi32> to vector<16x1xi32>
    %100 = vector.broadcast %99 : vector<16x1xi32> to vector<16x128xi32>
    %101 = arith.cmpi eq, %100, %0 : vector<16x128xi32>
    %102 = arith.extui %101 : vector<16x128xi1> to vector<16x128xi32>
    %103 = arith.sitofp %102 : vector<16x128xi32> to vector<16x128xf32>
    %104 = arith.addf %98, %103 : vector<16x128xf32>
    %105 = vector.extract_strided_slice %1 {offsets = [0, 17], sizes = [16, 1], strides = [1, 1]} : vector<16x24xi32> to vector<16x1xi32>
    %106 = vector.broadcast %105 : vector<16x1xi32> to vector<16x128xi32>
    %107 = arith.cmpi eq, %106, %0 : vector<16x128xi32>
    %108 = arith.extui %107 : vector<16x128xi1> to vector<16x128xi32>
    %109 = arith.sitofp %108 : vector<16x128xi32> to vector<16x128xf32>
    %110 = arith.addf %104, %109 : vector<16x128xf32>
    %111 = vector.extract_strided_slice %1 {offsets = [0, 18], sizes = [16, 1], strides = [1, 1]} : vector<16x24xi32> to vector<16x1xi32>
    %112 = vector.broadcast %111 : vector<16x1xi32> to vector<16x128xi32>
    %113 = arith.cmpi eq, %112, %0 : vector<16x128xi32>
    %114 = arith.extui %113 : vector<16x128xi1> to vector<16x128xi32>
    %115 = arith.sitofp %114 : vector<16x128xi32> to vector<16x128xf32>
    %116 = arith.addf %110, %115 : vector<16x128xf32>
    %117 = vector.extract_strided_slice %1 {offsets = [0, 19], sizes = [16, 1], strides = [1, 1]} : vector<16x24xi32> to vector<16x1xi32>
    %118 = vector.broadcast %117 : vector<16x1xi32> to vector<16x128xi32>
    %119 = arith.cmpi eq, %118, %0 : vector<16x128xi32>
    %120 = arith.extui %119 : vector<16x128xi1> to vector<16x128xi32>
    %121 = arith.sitofp %120 : vector<16x128xi32> to vector<16x128xf32>
    %122 = arith.addf %116, %121 : vector<16x128xf32>
    %123 = vector.extract_strided_slice %1 {offsets = [0, 20], sizes = [16, 1], strides = [1, 1]} : vector<16x24xi32> to vector<16x1xi32>
    %124 = vector.broadcast %123 : vector<16x1xi32> to vector<16x128xi32>
    %125 = arith.cmpi eq, %124, %0 : vector<16x128xi32>
    %126 = arith.extui %125 : vector<16x128xi1> to vector<16x128xi32>
    %127 = arith.sitofp %126 : vector<16x128xi32> to vector<16x128xf32>
    %128 = arith.addf %122, %127 : vector<16x128xf32>
    %129 = vector.extract_strided_slice %1 {offsets = [0, 21], sizes = [16, 1], strides = [1, 1]} : vector<16x24xi32> to vector<16x1xi32>
    %130 = vector.broadcast %129 : vector<16x1xi32> to vector<16x128xi32>
    %131 = arith.cmpi eq, %130, %0 : vector<16x128xi32>
    %132 = arith.extui %131 : vector<16x128xi1> to vector<16x128xi32>
    %133 = arith.sitofp %132 : vector<16x128xi32> to vector<16x128xf32>
    %134 = arith.addf %128, %133 : vector<16x128xf32>
    %135 = vector.extract_strided_slice %1 {offsets = [0, 22], sizes = [16, 1], strides = [1, 1]} : vector<16x24xi32> to vector<16x1xi32>
    %136 = vector.broadcast %135 : vector<16x1xi32> to vector<16x128xi32>
    %137 = arith.cmpi eq, %136, %0 : vector<16x128xi32>
    %138 = arith.extui %137 : vector<16x128xi1> to vector<16x128xi32>
    %139 = arith.sitofp %138 : vector<16x128xi32> to vector<16x128xf32>
    %140 = arith.addf %134, %139 : vector<16x128xf32>
    %141 = vector.extract_strided_slice %1 {offsets = [0, 23], sizes = [16, 1], strides = [1, 1]} : vector<16x24xi32> to vector<16x1xi32>
    %142 = vector.broadcast %141 : vector<16x1xi32> to vector<16x128xi32>
    %143 = arith.cmpi eq, %142, %0 : vector<16x128xi32>
    %144 = arith.extui %143 : vector<16x128xi1> to vector<16x128xi32>
    %145 = arith.sitofp %144 : vector<16x128xi32> to vector<16x128xf32>
    %146 = arith.addf %140, %145 : vector<16x128xf32>
    %c0_1 = arith.constant 0 : index
    %c0_2 = arith.constant 0 : index
    %147 = vector.load %arg4[%c0_1, %c0_2] : memref<128x128xf32, #tpu.memory_space<vmem>>, vector<128x128xf32>
    %cst_3 = arith.constant dense<0.000000e+00> : vector<16x128xf32>
    %148 = tpu.matmul %146, %147, %cst_3 {dimension_numbers = #tpu.dot_dimension_numbers<[1], [0], [0], [1], [0, 0, 1, 1], [], []>} : vector<16x128xf32>, vector<128x128xf32>, vector<16x128xf32> -> vector<16x128xf32>
    %c0_4 = arith.constant 0 : index
    %149 = memref.load %arg1[%c0_4] : memref<1xf32, #tpu.memory_space<smem>>
    %cst_5 = arith.constant 0.000000e+00 : f32
    %150 = vector.broadcast %cst_5 : f32 to vector<16x128xf32>
    %151 = arith.cmpf ogt, %148, %150 : vector<16x128xf32>
    %152 = vector.broadcast %149 : f32 to vector<16x128xf32>
    %153 = arith.mulf %152, %148 : vector<16x128xf32>
    %154 = arith.select %151, %148, %153 : vector<16x128xi1>, vector<16x128xf32>
    %c0_6 = arith.constant 0 : index
    %c0_7 = arith.constant 0 : index
    %155 = vector.load %arg3[%c0_6, %c0_7] : memref<16x1xi32, #tpu.memory_space<vmem>>, vector<16x1xi32>
    %156 = vector.broadcast %155 : vector<16x1xi32> to vector<16x128xi32>
    %157 = arith.cmpi eq, %156, %0 : vector<16x128xi32>
    %158 = arith.extui %157 : vector<16x128xi1> to vector<16x128xi32>
    %159 = arith.sitofp %158 : vector<16x128xi32> to vector<16x128xf32>
    %160 = arith.addf %154, %159 : vector<16x128xf32>
    %c0_8 = arith.constant 0 : index
    %c0_9 = arith.constant 0 : index
    %161 = vector.load %arg5[%c0_8, %c0_9] : memref<128x128xf32, #tpu.memory_space<vmem>>, vector<128x128xf32>
    %cst_10 = arith.constant dense<0.000000e+00> : vector<16x128xf32>
    %162 = tpu.matmul %160, %161, %cst_10 {dimension_numbers = #tpu.dot_dimension_numbers<[1], [0], [0], [1], [0, 0, 1, 1], [], []>} : vector<16x128xf32>, vector<128x128xf32>, vector<16x128xf32> -> vector<16x128xf32>
    %c0_11 = arith.constant 0 : index
    %c0_12 = arith.constant 0 : index
    %163 = vector.load %arg6[%c0_11, %c0_12] : memref<16x128xf32, #tpu.memory_space<vmem>>, vector<16x128xf32>
    tpu.vector_store %arg6[%c0_11, %c0_12], %162 {strides = array<i32>} : memref<16x128xf32, #tpu.memory_space<vmem>>, vector<16x128xf32>,
    return
  }
  func.func @transform_0(%arg0: i32) -> i32 {
    %c0_i32 = arith.constant 0 : i32
    %c0_i32_0 = arith.constant 0 : i32
    return %c0_i32 : i32
  }
  func.func @transform_1(%arg0: i32) -> (i32, i32) {
    %c0_i32 = arith.constant 0 : i32
    %c0_i32_0 = arith.constant 0 : i32
    return %arg0, %c0_i32 : i32, i32
  }
  func.func @transform_2(%arg0: i32) -> (i32, i32) {
    %c0_i32 = arith.constant 0 : i32
    %c0_i32_0 = arith.constant 0 : i32
    return %arg0, %c0_i32 : i32, i32
  }
  func.func @transform_3(%arg0: i32) -> (i32, i32) {
    %c0_i32 = arith.constant 0 : i32
    %c0_i32_0 = arith.constant 0 : i32
    %c0_i32_1 = arith.constant 0 : i32
    return %c0_i32, %c0_i32_0 : i32, i32
  }
  func.func @transform_4(%arg0: i32) -> (i32, i32) {
    %c0_i32 = arith.constant 0 : i32
    %c0_i32_0 = arith.constant 0 : i32
    %c0_i32_1 = arith.constant 0 : i32
    return %c0_i32, %c0_i32_0 : i32, i32
  }
  func.func @transform_5(%arg0: i32) -> (i32, i32) {
    %c0_i32 = arith.constant 0 : i32
    %c0_i32_0 = arith.constant 0 : i32
    return %arg0, %c0_i32 : i32, i32
  }
}

</mosaic_0001>

<bundles_post_ra>
// kernel: tpu_custom_call.1
= control target key start
LH: loop header
LB: loop body
LE: loop exit
PB: predicated region body
PF: predicated region fallthrough
CT: control target
= control target key end

     0   :  { %11 = vsyncpa [#allocation4], 0  ;;  %s1287_s0 = inlined_call_operand.<no memory space> [shape: f32[1], index: 0, kind: input, shape index: {}]   ;;  %s1288_s1 = inlined_call_operand.vmem [shape: s32[16,24], index: 1, kind: input, shape index: {}]   ;;  %s1289_s2 = inlined_call_operand.vmem [shape: s32[16,1], index: 2, kind: input, shape index: {}]   ;;  %s1290_s3 = inlined_call_operand.hbm [shape: f32[128,128], index: 3, kind: input, shape index: {}]   ;;  %s1291_s4 = inlined_call_operand.hbm [shape: f32[128,128], index: 4, kind: input, shape index: {}]   ;;  %s1292_s5 = inlined_call_operand.hbm [shape: f32[16,128], index: 5, kind: output, shape index: {}]  }
   0x1   :  { %12 = vsyncpa [#allocation7], 0 }
   0x2   :  { %13 = vsyncpa [#allocation5], 0  ;;  %s981_s18 = smov [#allocation3]   ;;  %s909_s22 = scalar_lea.hbm %s1290_s3, 2048 }
   0x3   :  { %s25_s19 = sshll.u32 %s981_s18, 4  ;;  %p910_p0 = scmp.ne.s32.totalorder %s1290_s3, %s909_s22  ;;  %s26_s19 = int_to_ptr.vmem [resolvable:$true] %s25_s19 }
   0x4   :  { %p913_p1 = scmp.lt.u32.totalorder %s909_s22, %s1290_s3 }
   0x6   :  { %p915_p2 = pnand %p913_p1, %p910_p0 }
   0x8   :  { %918 = shalt.err (!%p915_p2)
}
   0x9   :  { %s919_s27 = scalar_lea.vmem %s26_s19, 2048  ;;  %p924_p4 = scmp.lt.s32.totalorder %s26_s19, %s26_s19 }
   0xa   :  { %p920_p3 = scmp.ne.s32.totalorder %s26_s19, %s919_s27  ;;  %p925_p5 = scmp.lt.s32.totalorder %s919_s27, %s919_s27 }
   0xc   :  { %p926_p6 = por %p925_p5, %p924_p4 }
   0xe   :  { %p927_p7 = pnand %p926_p6, %p920_p3 }
  0x10   :  { %930 = shalt.err (!%p927_p7)
}
  0x11   :  { %s982_s28 = smov 128   ;;  %s983_s29 = smov 8  }
  0x12   :  { %31 = dma.hbm_to_vmem [thread:$0]  %s1290_s3, 2048, %s26_s19, [#allocation4], %s982_s28, %s982_s28, %s983_s29  }
  0x13   :  { %s984_s7 = smov [#allocation6]   ;;  %s931_s11 = scalar_lea.hbm %s1291_s4, 2048 }
  0x14   :  { %s37_s8 = sshll.u32 %s984_s7, 4  ;;  %p932_p8 = scmp.ne.s32.totalorder %s1291_s4, %s931_s11  ;;  %s38_s8 = int_to_ptr.vmem [resolvable:$true] %s37_s8 }
  0x15   :  { %p935_p9 = scmp.lt.u32.totalorder %s931_s11, %s1291_s4 }
  0x17   :  { %p937_p10 = pnand %p935_p9, %p932_p8 }
  0x19   :  { %940 = shalt.err (!%p937_p10)
}
  0x1a   :  { %s941_s16 = scalar_lea.vmem %s38_s8, 2048  ;;  %p946_p12 = scmp.lt.s32.totalorder %s38_s8, %s38_s8 }
  0x1b   :  { %p942_p11 = scmp.ne.s32.totalorder %s38_s8, %s941_s16  ;;  %p947_p13 = scmp.lt.s32.totalorder %s941_s16, %s941_s16 }
  0x1d   :  { %p948_p0 = por %p947_p13, %p946_p12 }
  0x1f   :  { %p949_p1 = pnand %p948_p0, %p942_p11 }
  0x21   :  { %952 = shalt.err (!%p949_p1)
}
  0x22   :  { %43 = dma.hbm_to_vmem [thread:$0]  %s1291_s4, 2048, %s38_s8, [#allocation7], %s982_s28, %s982_s28, %s983_s29  }
  0x23   :  { %975 = dma.done.wait [#allocation4], 2048  }
  0x24   :  { %976 = vsyncadd [#allocation4], 4294965248 }
  0x25   :  { %977 = dma.done.wait [#allocation7], 2048  }
  0x26   :  { %978 = vsyncadd [#allocation7], 4294965248  ;;  %v985_v0 = vmov 0   ;;  %v1076_v1 = vld [vmem:[%s1288_s1 + $0x8] sm:$0xff]  ;;  %v1081_v2 = vld [vmem:[%s1288_s1] sm:$0xff]  ;;  %v986_v3 = vmov 1   ;;  %v50_v34 = vlaneseq }
  0x27   :  { %868 = vset.pattern.permute.xlu1 %v985_v0  ;;  %866 = vset.pattern.permute.xlu0 %v985_v0  ;;  %v987_v4 = vmov 2   ;;  %v988_v5 = vmov 3   ;;  %v989_v6 = vmov 4   ;;  %v990_v7 = vmov 5   ;;  %v390_v25 = vld [vmem:[#allocation3] sm:$0xff]  ;;  %v391_v26 = vld [vmem:[#allocation3 + $0x8] sm:$0xff] }
  0x28   :  { %58 = vperm.xlu1 %868, %v1076_v1   ;;  %55 = vperm.xlu0 %866, %v1081_v2   ;;  %v991_v8 = vmov 7   ;;  %v992_v9 = vmov 8   ;;  %v993_v10 = vmov 6   ;;  %v994_v11 = vmov 10   ;;  %v392_v28 = vld [vmem:[#allocation3 + $0x10] sm:$0xff]  ;;  %v393_v29 = vld [vmem:[#allocation3 + $0x18] sm:$0xff] }
  0x29   :  { %v995_v12 = vmov 11   ;;  %v996_v13 = vmov 13   ;;  %v997_v14 = vmov 14   ;;  %v998_v15 = vmov 9   ;;  %v394_v31 = vld [vmem:[#allocation3 + $0x20] sm:$0xff]  ;;  %v395_v32 = vld [vmem:[#allocation3 + $0x28] sm:$0xff] }
  0x2a   :  { %v999_v16 = vmov 16   ;;  %v1000_v17 = vmov 17   ;;  %v1001_v18 = vmov 19   ;;  %v1002_v19 = vmov 20   ;;  %v396_v35 = vld [vmem:[#allocation3 + $0x30] sm:$0xff]  ;;  %v397_v36 = vld [vmem:[#allocation3 + $0x38] sm:$0xff] }
  0x2b   :  { %v1003_v20 = vmov 12   ;;  %v1004_v21 = vmov 22   ;;  %v1005_v22 = vmov 23   ;;  %v1006_v23 = vmov 15   ;;  %v398_v42 = vld [vmem:[#allocation3 + $0x40] sm:$0xff]  ;;  %v399_v43 = vld [vmem:[#allocation3 + $0x48] sm:$0xff] }
  0x2c   :  { %869 = vset.pattern.permute.xlu1 %v986_v3  ;;  %867 = vset.pattern.permute.xlu0 %v986_v3  ;;  %v1007_v24 = vmov 18   ;;  %v772_v27 = vpack.c.bf16 %v391_v26, %v390_v25  ;;  %v776_v30 = vpack.c.bf16 %v393_v29, %v392_v28  ;;  %v780_v33 = vpack.c.bf16 %v395_v32, %v394_v31  ;;  %v400_v47 = vld [vmem:[#allocation3 + $0x50] sm:$0xff]  ;;  %v401_v48 = vld [vmem:[#allocation3 + $0x58] sm:$0xff]  ;;  %v402_v57 = vld [vmem:[#allocation3 + $0x60] sm:$0xff] }
  0x2d   :  { %72 = vperm.xlu1 %869, %v1076_v1   ;;  %69 = vperm.xlu0 %867, %v1081_v2   ;;  %v784_v37 = vpack.c.bf16 %v397_v36, %v396_v35  ;;  %v1130_v38 = vand.u32 127, %v50_v34  ;;  %v1008_v41 = vmov 21   ;;  %v788_v44 = vpack.c.bf16 %v399_v43, %v398_v42  ;;  %v403_v58 = vld [vmem:[#allocation3 + $0x68] sm:$0xff]  ;;  %v404_v63 = vld [vmem:[#allocation3 + $0x70] sm:$0xff]  ;;  %v405_v3 = vld [vmem:[#allocation3 + $0x78] sm:$0xff] }
  0x2e   :  { %773 = vmatprep.subr.bf16.mxu0 %v772_v27  ;;  %v1009_v49 = vmov 0.0   ;;  %v792_v52 = vpack.c.bf16 %v401_v48, %v400_v47  ;;  %v796_v60 = vpack.c.bf16 %v403_v58, %v402_v57  ;;  %v514_v28 = vld [vmem:[#allocation6 + $0x48] sm:$0xff]  ;;  %v515_v31 = vld [vmem:[#allocation6 + $0x50] sm:$0xff]  ;;  %v516_v32 = vld [vmem:[#allocation6 + $0x58] sm:$0xff] }
  0x2f   :  { %775 = vmatpush3.bf16.msra.mxu0 %v772_v27  ;;  %v513_v27 = vld [vmem:[#allocation6 + $0x40] sm:$0xff]  ;;  %v824_v34 = vpack.c.bf16 %v516_v32, %v515_v31 }
  0x30   :  { %777 = vmatprep.subr.bf16.mxu0 %v776_v30 }
  0x31   :  { %870 = vset.pattern.permute.xlu1 %v987_v4  ;;  %871 = vset.pattern.permute.xlu0 %v987_v4 }
  0x32   :  { %83 = vperm.xlu1 %870, %v1081_v2   ;;  %86 = vperm.xlu0 %871, %v1076_v1  }
  0x33   :  { %779 = vmatpush3.bf16.msra.mxu0 %v776_v30  ;;  %v820_v30 = vpack.c.bf16 %v514_v28, %v513_v27 }
  0x34   :  { %781 = vmatprep.subr.bf16.mxu0 %v780_v33 }
  0x36   :  { %872 = vset.pattern.permute.xlu1 %v988_v5  ;;  %873 = vset.pattern.permute.xlu0 %v989_v6  ;;  %v800_v5 = vpack.c.bf16 %v405_v3, %v404_v63 }
  0x37   :  { %97 = vperm.xlu1 %872, %v1081_v2   ;;  %111 = vperm.xlu0 %873, %v1081_v2  }
  0x38   :  { %783 = vmatpush3.bf16.msra.mxu0 %v780_v33 }
  0x39   :  { %785 = vmatprep.subr.bf16.mxu0 %v784_v37 }
  0x3b   :  { %100 = vperm.xlu1 %872, %v1076_v1   ;;  %876 = vset.pattern.permute.xlu0 %v990_v7 }
  0x3c   :  { %128 = vperm.xlu0 %876, %v1076_v1   ;;  %787 = vmatpush3.bf16.msra.mxu0 %v784_v37 }
  0x3d   :  { %789 = vmatprep.subr.bf16.mxu0 %v788_v44 }
  0x3f   :  { %874 = vset.pattern.permute.xlu1 %v989_v6 }
  0x40   :  { %114 = vperm.xlu1 %874, %v1076_v1   ;;  %878 = vset.pattern.permute.xlu0 %v991_v8 }
  0x41   :  { %153 = vperm.xlu0 %878, %v1081_v2   ;;  %791 = vmatpush3.bf16.msra.mxu0 %v788_v44 }
  0x42   :  { %793 = vmatprep.subr.bf16.mxu0 %v792_v52 }
  0x44   :  { %875 = vset.pattern.permute.xlu1 %v990_v7 }
  0x45   :  { %125 = vperm.xlu1 %875, %v1081_v2   ;;  %881 = vset.pattern.permute.xlu0 %v992_v9 }
  0x46   :  { %170 = vperm.xlu0 %881, %v1076_v1   ;;  %795 = vmatpush3.bf16.msra.mxu0 %v792_v52 }
  0x47   :  { %797 = vmatprep.subr.bf16.mxu0 %v796_v60 }
  0x49   :  { %877 = vset.pattern.permute.xlu1 %v993_v10 }
  0x4a   :  { %139 = vperm.xlu1 %877, %v1081_v2   ;;  %883 = vset.pattern.permute.xlu0 %v994_v11 }
  0x4b   :  { %195 = vperm.xlu0 %883, %v1081_v2   ;;  %799 = vmatpush3.bf16.msra.mxu0 %v796_v60 }
  0x4c   :  { %801 = vmatprep.subr.bf16.mxu0 %v800_v5 }
  0x4e   :  { %142 = vperm.xlu1 %877, %v1076_v1  }
  0x4f   :  { %886 = vset.pattern.permute.xlu0 %v995_v12  ;;  %803 = vmatpush3.bf16.msra.mxu0 %v800_v5 }
  0x50   :  { %212 = vperm.xlu0 %886, %v1076_v1  }
  0x52   :  { %879 = vset.pattern.permute.xlu1 %v991_v8 }
  0x53   :  { %156 = vperm.xlu1 %879, %v1076_v1  }
  0x54   :  { %888 = vset.pattern.permute.xlu0 %v996_v13 }
  0x55   :  { %237 = vperm.xlu0 %888, %v1081_v2  }
  0x57   :  { %880 = vset.pattern.permute.xlu1 %v992_v9 }
  0x58   :  { %167 = vperm.xlu1 %880, %v1081_v2  }
  0x59   :  { %891 = vset.pattern.permute.xlu0 %v997_v14 }
  0x5a   :  { %254 = vperm.xlu0 %891, %v1076_v1  }
  0x5c   :  { %882 = vset.pattern.permute.xlu1 %v998_v15  ;;  %v507_v15 = vld [vmem:[#allocation6 + $0x10] sm:$0xff] }
  0x5d   :  { %181 = vperm.xlu1 %882, %v1081_v2  }
  0x5e   :  { %893 = vset.pattern.permute.xlu0 %v999_v16 }
  0x5f   :  { %279 = vperm.xlu0 %893, %v1081_v2  }
  0x61   :  { %184 = vperm.xlu1 %882, %v1076_v1  }
  0x63   :  { %896 = vset.pattern.permute.xlu0 %v1000_v17 }
  0x64   :  { %296 = vperm.xlu0 %896, %v1076_v1  }
  0x65   :  { %884 = vset.pattern.permute.xlu1 %v994_v11 }
  0x66   :  { %198 = vperm.xlu1 %884, %v1076_v1  }
  0x68   :  { %898 = vset.pattern.permute.xlu0 %v1001_v18 }
  0x69   :  { %321 = vperm.xlu0 %898, %v1081_v2  }
  0x6a   :  { %885 = vset.pattern.permute.xlu1 %v995_v12  ;;  %v505_v12 = vld [vmem:[#allocation6] sm:$0xff] }
  0x6b   :  { %209 = vperm.xlu1 %885, %v1081_v2  }
  0x6d   :  { %901 = vset.pattern.permute.xlu0 %v1002_v19 }
  0x6e   :  { %338 = vperm.xlu0 %901, %v1076_v1  }
  0x6f   :  { %887 = vset.pattern.permute.xlu1 %v1003_v20 }
  0x70   :  { %223 = vperm.xlu1 %887, %v1081_v2  }
  0x72   :  { %903 = vset.pattern.permute.xlu0 %v1004_v21 }
  0x73   :  { %363 = vperm.xlu0 %903, %v1081_v2  }
  0x74   :  { %226 = vperm.xlu1 %887, %v1076_v1  }
  0x77   :  { %906 = vset.pattern.permute.xlu0 %v1005_v22 }
  0x78   :  { %889 = vset.pattern.permute.xlu1 %v996_v13  ;;  %380 = vperm.xlu0 %906, %v1076_v1  }
  0x79   :  { %240 = vperm.xlu1 %889, %v1076_v1  }
  0x7c   :  { %908 = vset.pattern.permute.xlu0 %v985_v0 }
  0x7d   :  { %890 = vset.pattern.permute.xlu1 %v997_v14  ;;  %v506_v14 = vld [vmem:[#allocation6 + $0x8] sm:$0xff] }
  0x7e   :  { %251 = vperm.xlu1 %890, %v1081_v2  }
  0x82   :  { %892 = vset.pattern.permute.xlu1 %v1006_v23  ;;  %v511_v23 = vld [vmem:[#allocation6 + $0x30] sm:$0xff] }
  0x83   :  { %265 = vperm.xlu1 %892, %v1081_v2  }
  0x87   :  { %268 = vperm.xlu1 %892, %v1076_v1  }
  0x8b   :  { %894 = vset.pattern.permute.xlu1 %v999_v16  ;;  %v508_v16 = vld [vmem:[#allocation6 + $0x18] sm:$0xff] }
  0x8c   :  { %282 = vperm.xlu1 %894, %v1076_v1  }
  0x90   :  { %895 = vset.pattern.permute.xlu1 %v1000_v17  ;;  %v490_v17 = vld [vmem:[%s1289_s2 + $0x8] sm:$0xff] }
  0x91   :  { %293 = vperm.xlu1 %895, %v1081_v2  }
  0x95   :  { %897 = vset.pattern.permute.xlu1 %v1007_v24  ;;  %v512_v24 = vld [vmem:[#allocation6 + $0x38] sm:$0xff] }
  0x96   :  { %307 = vperm.xlu1 %897, %v1081_v2   ;;  %v816_v26 = vpack.c.bf16 %v512_v24, %v511_v23 }
  0x9a   :  { %310 = vperm.xlu1 %897, %v1076_v1  }
  0x9e   :  { %899 = vset.pattern.permute.xlu1 %v1001_v18  ;;  %v804_v18 = vpack.c.bf16 %v506_v14, %v505_v12 }
  0x9f   :  { %324 = vperm.xlu1 %899, %v1076_v1  }
  0xa0   :  { %805 = vmatprep.subr.bf16.mxu1 %v804_v18 }
  0xa1   :  { %807 = vmatpush3.bf16.msra.mxu1 %v804_v18 }
  0xa3   :  { %900 = vset.pattern.permute.xlu1 %v1002_v19  ;;  %v808_v19 = vpack.c.bf16 %v508_v16, %v507_v15 }
  0xa4   :  { %335 = vperm.xlu1 %900, %v1081_v2  }
  0xa5   :  { %809 = vmatprep.subr.bf16.mxu1 %v808_v19 }
  0xa6   :  { %811 = vmatpush3.bf16.msra.mxu1 %v808_v19 }
  0xa7   :  { %v59_v39 = vpop.permute.xlu1 %58  ;;  %v56_v40 = vpop.permute.xlu0 %55 }
  0xa8   :  { %902 = vset.pattern.permute.xlu1 %v1008_v41  ;;  %vm61_vm0 = vcmp.eq.s32.totalorder %v59_v39, %v1130_v38  ;;  %vm60_vm1 = vcmp.eq.s32.totalorder %v56_v40, %v1130_v38 }
  0xa9   :  { %349 = vperm.xlu1 %902, %v1081_v2   ;;  %v617_v50 = vsel %vm61_vm0, 1.0, %v1009_v49  ;;  %v616_v54 = vsel %vm60_vm1, 1.0, %v1009_v49 }
  0xac   :  { %v73_v45 = vpop.permute.xlu1 %72  ;;  %v70_v46 = vpop.permute.xlu0 %69 }
  0xad   :  { %vm75_vm2 = vcmp.eq.s32.totalorder %v73_v45, %v1130_v38  ;;  %352 = vperm.xlu1 %902, %v1076_v1   ;;  %vm74_vm3 = vcmp.eq.s32.totalorder %v70_v46, %v1130_v38 }
  0xae   :  { %v619_v51 = vsel %vm75_vm2, 1.0, %v1009_v49  ;;  %v618_v55 = vsel %vm74_vm3, 1.0, %v1009_v49 }
  0xaf   :  { %v81_v53 = vadd.f32 %v619_v51, %v617_v50  ;;  %v80_v61 = vadd.f32 %v618_v55, %v616_v54 }
  0xb1   :  { %904 = vset.pattern.permute.xlu1 %v1004_v21  ;;  %v84_v56 = vpop.permute.xlu1 %83  ;;  %v87_v59 = vpop.permute.xlu0 %86  ;;  %v510_v21 = vld [vmem:[#allocation6 + $0x28] sm:$0xff] }
  0xb2   :  { %vm88_vm4 = vcmp.eq.s32.totalorder %v84_v56, %v1130_v38  ;;  %366 = vperm.xlu1 %904, %v1076_v1   ;;  %vm89_vm5 = vcmp.eq.s32.totalorder %v87_v59, %v1130_v38 }
  0xb3   :  { %v620_v62 = vsel %vm88_vm4, 1.0, %v1009_v49  ;;  %v621_v1 = vsel %vm89_vm5, 1.0, %v1009_v49 }
  0xb4   :  { %v94_v6 = vadd.f32 %v620_v62, %v80_v61  ;;  %v95_v10 = vadd.f32 %v621_v1, %v81_v53 }
  0xb6   :  { %905 = vset.pattern.permute.xlu1 %v1005_v22  ;;  %v98_v4 = vpop.permute.xlu1 %97  ;;  %v112_v45 = vpop.permute.xlu0 %111 }
  0xb7   :  { %vm102_vm6 = vcmp.eq.s32.totalorder %v98_v4, %v1130_v38  ;;  %377 = vperm.xlu1 %905, %v1081_v2   ;;  %v489_v2 = vld [vmem:[%s1289_s2] sm:$0xff]  ;;  %vm116_vm9 = vcmp.eq.s32.totalorder %v112_v45, %v1130_v38 }
  0xb8   :  { %v622_v7 = vsel %vm102_vm6, 1.0, %v1009_v49  ;;  %v624_v51 = vsel %vm116_vm9, 1.0, %v1009_v49 }
  0xb9   :  { %v1152_v8 = vadd.f32 %v622_v7, %v94_v6 }
  0xba   :  { %v101_v9 = vpop.permute.xlu1 %100 }
  0xbb   :  { %vm103_vm7 = vcmp.eq.s32.totalorder %v101_v9, %v1130_v38  ;;  %907 = vset.pattern.permute.xlu1 %v985_v0  ;;  %v509_v0 = vld [vmem:[#allocation6 + $0x20] sm:$0xff]  ;;  %v129_v47 = vpop.permute.xlu0 %128  ;;  %v122_v56 = vadd.f32 %v624_v51, %v1152_v8 }
  0xbc   :  { %v623_v11 = vsel %vm103_vm7, 1.0, %v1009_v49  ;;  %492 = vperm.xlu1 %907, %v489_v2   ;;  %v812_v22 = vpack.c.bf16 %v510_v21, %v509_v0  ;;  %vm131_vm11 = vcmp.eq.s32.totalorder %v129_v47, %v1130_v38 }
  0xbd   :  { %v109_v13 = vadd.f32 %v623_v11, %v95_v10  ;;  %v627_v57 = vsel %vm131_vm11, 1.0, %v1009_v49 }
  0xbe   :  { %813 = vmatprep.subr.bf16.mxu1 %v812_v22 }
  0xbf   :  { %v115_v20 = vpop.permute.xlu1 %114  ;;  %815 = vmatpush3.bf16.msra.mxu1 %v812_v22 }
  0xc0   :  { %495 = vperm.xlu1 %907, %v490_v17   ;;  %817 = vmatprep.subr.bf16.mxu1 %v816_v26  ;;  %vm117_vm8 = vcmp.eq.s32.totalorder %v115_v20, %v1130_v38  ;;  %v154_v52 = vpop.permute.xlu0 %153 }
  0xc1   :  { %v625_v50 = vsel %vm117_vm8, 1.0, %v1009_v49  ;;  %vm158_vm15 = vcmp.eq.s32.totalorder %v154_v52, %v1130_v38 }
  0xc2   :  { %v123_v53 = vadd.f32 %v625_v50, %v109_v13  ;;  %v630_v5 = vsel %vm158_vm15, 1.0, %v1009_v49 }
  0xc3   :  { %819 = vmatpush3.bf16.msra.mxu1 %v816_v26 }
  0xc4   :  { %v126_v25 = vpop.permute.xlu1 %125  ;;  %821 = vmatprep.subr.bf16.mxu1 %v820_v30  ;;  %v137_v62 = vadd.f32 %v627_v57, %v123_v53 }
  0xc5   :  { %vm130_vm10 = vcmp.eq.s32.totalorder %v126_v25, %v1130_v38  ;;  %v171_v61 = vpop.permute.xlu0 %170 }
  0xc6   :  { %v626_v54 = vsel %vm130_vm10, 1.0, %v1009_v49  ;;  %vm173_vm1 = vcmp.eq.s32.totalorder %v171_v61, %v1130_v38 }
  0xc7   :  { %823 = vmatpush3.bf16.msra.mxu1 %v820_v30  ;;  %v136_v59 = vadd.f32 %v626_v54, %v122_v56  ;;  %v633_v10 = vsel %vm173_vm1, 1.0, %v1009_v49 }
  0xc8   :  { %825 = vmatprep.subr.bf16.mxu1 %v824_v34 }
  0xc9   :  { %v140_v29 = vpop.permute.xlu1 %139 }
  0xca   :  { %vm144_vm12 = vcmp.eq.s32.totalorder %v140_v29, %v1130_v38  ;;  %v196_v1 = vpop.permute.xlu0 %195 }
  0xcb   :  { %827 = vmatpush3.bf16.msra.mxu1 %v824_v34  ;;  %v628_v58 = vsel %vm144_vm12, 1.0, %v1009_v49  ;;  %vm200_vm5 = vcmp.eq.s32.totalorder %v196_v1, %v1130_v38 }
  0xcc   :  { %v150_v63 = vadd.f32 %v628_v58, %v136_v59  ;;  %v636_v18 = vsel %vm200_vm5, 1.0, %v1009_v49 }
  0xcd   :  { %v143_v33 = vpop.permute.xlu1 %142 }
  0xce   :  { %vm145_vm13 = vcmp.eq.s32.totalorder %v143_v33, %v1130_v38  ;;  %v164_v9 = vadd.f32 %v630_v5, %v150_v63 }
  0xcf   :  { %v629_v60 = vsel %vm145_vm13, 1.0, %v1009_v49  ;;  %v213_v14 = vpop.permute.xlu0 %212 }
  0xd0   :  { %v151_v6 = vadd.f32 %v629_v60, %v137_v62  ;;  %vm215_vm7 = vcmp.eq.s32.totalorder %v213_v14, %v1130_v38 }
  0xd1   :  { %v639_v24 = vsel %vm215_vm7, 1.0, %v1009_v49 }
  0xd2   :  { %v157_v35 = vpop.permute.xlu1 %156 }
  0xd3   :  { %vm159_vm14 = vcmp.eq.s32.totalorder %v157_v35, %v1130_v38 }
  0xd4   :  { %v631_v3 = vsel %vm159_vm14, 1.0, %v1009_v49  ;;  %v238_v20 = vpop.permute.xlu0 %237 }
  0xd5   :  { %v165_v7 = vadd.f32 %v631_v3, %v151_v6  ;;  %vm242_vm11 = vcmp.eq.s32.totalorder %v238_v20, %v1130_v38 }
  0xd6   :  { %v642_v33 = vsel %vm242_vm11, 1.0, %v1009_v49 }
  0xd7   :  { %v168_v36 = vpop.permute.xlu1 %167  ;;  %v179_v15 = vadd.f32 %v633_v10, %v165_v7 }
  0xd8   :  { %vm172_vm0 = vcmp.eq.s32.totalorder %v168_v36, %v1130_v38 }
  0xd9   :  { %v632_v8 = vsel %vm172_vm0, 1.0, %v1009_v49  ;;  %v255_v28 = vpop.permute.xlu0 %254 }
  0xda   :  { %v178_v12 = vadd.f32 %v632_v8, %v164_v9  ;;  %vm257_vm13 = vcmp.eq.s32.totalorder %v255_v28, %v1130_v38  ;;  %v518_v28 = vld [vmem:[#allocation6 + $0x68] sm:$0xff] }
  0xdc   :  { %v182_v37 = vpop.permute.xlu1 %181 }
  0xdd   :  { %vm186_vm2 = vcmp.eq.s32.totalorder %v182_v37, %v1130_v38 }
  0xde   :  { %v634_v11 = vsel %vm186_vm2, 1.0, %v1009_v49  ;;  %v280_v35 = vpop.permute.xlu0 %279 }
  0xdf   :  { %v192_v16 = vadd.f32 %v634_v11, %v178_v12  ;;  %vm284_vm1 = vcmp.eq.s32.totalorder %v280_v35, %v1130_v38 }
  0xe0   :  { %v185_v39 = vpop.permute.xlu1 %184  ;;  %v648_v51 = vsel %vm284_vm1, 1.0, %v1009_v49 }
  0xe1   :  { %vm187_vm3 = vcmp.eq.s32.totalorder %v185_v39, %v1130_v38  ;;  %v206_v23 = vadd.f32 %v636_v18, %v192_v16 }
  0xe2   :  { %v635_v13 = vsel %vm187_vm3, 1.0, %v1009_v49 }
  0xe3   :  { %v193_v19 = vadd.f32 %v635_v13, %v179_v15  ;;  %v297_v45 = vpop.permute.xlu0 %296 }
  0xe4   :  { %vm299_vm3 = vcmp.eq.s32.totalorder %v297_v45, %v1130_v38 }
  0xe5   :  { %v199_v40 = vpop.permute.xlu1 %198  ;;  %v651_v57 = vsel %vm299_vm3, 1.0, %v1009_v49 }
  0xe6   :  { %vm201_vm4 = vcmp.eq.s32.totalorder %v199_v40, %v1130_v38 }
  0xe7   :  { %v637_v17 = vsel %vm201_vm4, 1.0, %v1009_v49 }
  0xe8   :  { %v207_v21 = vadd.f32 %v637_v17, %v193_v19  ;;  %v322_v53 = vpop.permute.xlu0 %321 }
  0xe9   :  { %vm326_vm7 = vcmp.eq.s32.totalorder %v322_v53, %v1130_v38 }
  0xea   :  { %v210_v41 = vpop.permute.xlu1 %209  ;;  %v221_v30 = vadd.f32 %v639_v24, %v207_v21  ;;  %v654_v5 = vsel %vm326_vm7, 1.0, %v1009_v49 }
  0xeb   :  { %vm214_vm6 = vcmp.eq.s32.totalorder %v210_v41, %v1130_v38  ;;  %v645_v41 = vsel %vm257_vm13, 1.0, %v1009_v49 }
  0xec   :  { %v638_v22 = vsel %vm214_vm6, 1.0, %v1009_v49 }
  0xed   :  { %v220_v26 = vadd.f32 %v638_v22, %v206_v23  ;;  %v339_v62 = vpop.permute.xlu0 %338 }
  0xef   :  { %v1163_v42 = vpop.permute.xlu1 %223 }
  0xf0   :  { %vm228_vm8 = vcmp.eq.s32.totalorder %v1163_v42, %v1130_v38 }
  0xf1   :  { %v640_v25 = vsel %vm228_vm8, 1.0, %v1009_v49 }
  0xf2   :  { %v234_v31 = vadd.f32 %v640_v25, %v220_v26  ;;  %v364_v7 = vpop.permute.xlu0 %363 }
  0xf3   :  { %v1165_v43 = vpop.permute.xlu1 %226 }
  0xf4   :  { %vm229_vm9 = vcmp.eq.s32.totalorder %v1165_v43, %v1130_v38  ;;  %v248_v40 = vadd.f32 %v642_v33, %v234_v31  ;;  %v520_v31 = vld [vmem:[#allocation6 + $0x78] sm:$0xff] }
  0xf5   :  { %v641_v27 = vsel %vm229_vm9, 1.0, %v1009_v49  ;;  %vm341_vm9 = vcmp.eq.s32.totalorder %v339_v62, %v1130_v38 }
  0xf6   :  { %v235_v34 = vadd.f32 %v641_v27, %v221_v30  ;;  %v657_v11 = vsel %vm341_vm9, 1.0, %v1009_v49  ;;  %v517_v27 = vld [vmem:[#allocation6 + $0x60] sm:$0xff]  ;;  %v519_v30 = vld [vmem:[#allocation6 + $0x70] sm:$0xff] }
  0xf7   :  { %v381_v15 = vpop.permute.xlu0 %380 }
  0xf8   :  { %v1167_v44 = vpop.permute.xlu1 %240 }
  0xf9   :  { %vm243_vm10 = vcmp.eq.s32.totalorder %v1167_v44, %v1130_v38 }
  0xfa   :  { %v643_v32 = vsel %vm243_vm10, 1.0, %v1009_v49 }
  0xfb   :  { %v249_v36 = vadd.f32 %v643_v32, %v235_v34  ;;  %v832_v32 = vpack.c.bf16 %v520_v31, %v519_v30  ;;  %v484_v34 = vstv %s1287_s0  ;;  %s1010_s0 = smov [#allocation8]  }
  0xfc   :  { %s603_s25 = sshll.u32 %s1010_s0, 4  ;;  %s604_s25 = int_to_ptr.vmem [resolvable:$true] %s603_s25 }
  0xfd   :  { %v1169_v46 = vpop.permute.xlu1 %251  ;;  %s953_s26 = scalar_lea.vmem %s604_s25, 256  ;;  %p958_p3 = scmp.lt.s32.totalorder %s604_s25, %s604_s25 }
  0xfe   :  { %vm256_vm12 = vcmp.eq.s32.totalorder %v1169_v46, %v1130_v38  ;;  %v263_v46 = vadd.f32 %v645_v41, %v249_v36  ;;  %p954_p2 = scmp.ne.s32.totalorder %s604_s25, %s953_s26  ;;  %p959_p4 = scmp.lt.s32.totalorder %s953_s26, %s953_s26 }
  0xff   :  { %v644_v37 = vsel %vm256_vm12, 1.0, %v1009_v49  ;;  %vm368_vm12 = vcmp.eq.s32.totalorder %v364_v7, %v1130_v38 }
 0x100   :  { %v262_v43 = vadd.f32 %v644_v37, %v248_v40  ;;  %v660_v19 = vsel %vm368_vm12, 1.0, %v1009_v49  ;;  %p960_p5 = por %p959_p4, %p958_p3 }
 0x102   :  { %v1173_v48 = vpop.permute.xlu1 %265  ;;  %p961_p6 = pnand %p960_p5, %p954_p2 }
 0x103   :  { %vm270_vm14 = vcmp.eq.s32.totalorder %v1173_v48, %v1130_v38 }
 0x104   :  { %v646_v42 = vsel %vm270_vm14, 1.0, %v1009_v49  ;;  %vm383_vm14 = vcmp.eq.s32.totalorder %v381_v15, %v1130_v38 }
 0x105   :  { %v276_v47 = vadd.f32 %v646_v42, %v262_v43  ;;  %v663_v22 = vsel %vm383_vm14, 1.0, %v1009_v49 }
 0x106   :  { %v1182_v55 = vpop.permute.xlu1 %268 }
 0x107   :  { %vm271_vm15 = vcmp.eq.s32.totalorder %v1182_v55, %v1130_v38  ;;  %v290_v56 = vadd.f32 %v648_v51, %v276_v47 }
 0x108   :  { %v647_v44 = vsel %vm271_vm15, 1.0, %v1009_v49 }
 0x109   :  { %v277_v52 = vadd.f32 %v647_v44, %v263_v46 }
 0x10b   :  { %v1192_v4 = vpop.permute.xlu1 %282 }
 0x10c   :  { %vm285_vm0 = vcmp.eq.s32.totalorder %v1192_v4, %v1130_v38 }
 0x10d   :  { %v649_v48 = vsel %vm285_vm0, 1.0, %v1009_v49 }
 0x10e   :  { %v291_v54 = vadd.f32 %v649_v48, %v277_v52 }
 0x110   :  { %v294_v2 = vpop.permute.xlu1 %293  ;;  %v305_v63 = vadd.f32 %v651_v57, %v291_v54 }
 0x111   :  { %vm298_vm2 = vcmp.eq.s32.totalorder %v294_v2, %v1130_v38 }
 0x112   :  { %v650_v55 = vsel %vm298_vm2, 1.0, %v1009_v49 }
 0x113   :  { %v304_v60 = vadd.f32 %v650_v55, %v290_v56 }
 0x115   :  { %v308_v0 = vpop.permute.xlu1 %307 }
 0x116   :  { %vm312_vm4 = vcmp.eq.s32.totalorder %v308_v0, %v1130_v38 }
 0x117   :  { %v652_v58 = vsel %vm312_vm4, 1.0, %v1009_v49 }
 0x118   :  { %v318_v3 = vadd.f32 %v652_v58, %v304_v60 }
 0x119   :  { %v311_v29 = vpop.permute.xlu1 %310 }
 0x11a   :  { %vm313_vm5 = vcmp.eq.s32.totalorder %v311_v29, %v1130_v38  ;;  %v332_v10 = vadd.f32 %v654_v5, %v318_v3  ;;  %v828_v29 = vpack.c.bf16 %v518_v28, %v517_v27 }
 0x11b   :  { %v653_v61 = vsel %vm313_vm5, 1.0, %v1009_v49 }
 0x11c   :  { %v319_v6 = vadd.f32 %v653_v61, %v305_v63  ;;  %829 = vmatprep.subr.bf16.mxu1 %v828_v29 }
 0x11d   :  { %831 = vmatpush3.bf16.msra.mxu1 %v828_v29 }
 0x11e   :  { %v325_v39 = vpop.permute.xlu1 %324  ;;  %833 = vmatprep.subr.bf16.mxu1 %v832_v32 }
 0x11f   :  { %vm327_vm6 = vcmp.eq.s32.totalorder %v325_v39, %v1130_v38 }
 0x120   :  { %v655_v4 = vsel %vm327_vm6, 1.0, %v1009_v49 }
 0x121   :  { %v333_v8 = vadd.f32 %v655_v4, %v319_v6  ;;  %835 = vmatpush3.bf16.msra.mxu1 %v832_v32 }
 0x123   :  { %v336_v50 = vpop.permute.xlu1 %335  ;;  %v347_v16 = vadd.f32 %v657_v11, %v333_v8 }
 0x124   :  { %vm340_vm8 = vcmp.eq.s32.totalorder %v336_v50, %v1130_v38 }
 0x125   :  { %v656_v9 = vsel %vm340_vm8, 1.0, %v1009_v49 }
 0x126   :  { %v346_v12 = vadd.f32 %v656_v9, %v332_v10 }
 0x128   :  { %v350_v59 = vpop.permute.xlu1 %349 }
 0x129   :  { %vm354_vm10 = vcmp.eq.s32.totalorder %v350_v59, %v1130_v38 }
 0x12a   :  { %v658_v2 = vsel %vm354_vm10, 1.0, %v1009_v49 }
 0x12b   :  { %v360_v17 = vadd.f32 %v658_v2, %v346_v12 }
 0x12c   :  { %v353_v1 = vpop.permute.xlu1 %352 }
 0x12d   :  { %vm355_vm11 = vcmp.eq.s32.totalorder %v353_v1, %v1130_v38  ;;  %v374_v23 = vadd.f32 %v660_v19, %v360_v17 }
 0x12e   :  { %v659_v13 = vsel %vm355_vm11, 1.0, %v1009_v49 }
 0x12f   :  { %v361_v20 = vadd.f32 %v659_v13, %v347_v16 }
 0x131   :  { %v367_v14 = vpop.permute.xlu1 %366 }
 0x132   :  { %vm369_vm13 = vcmp.eq.s32.totalorder %v367_v14, %v1130_v38 }
 0x133   :  { %v661_v18 = vsel %vm369_vm13, 1.0, %v1009_v49 }
 0x134   :  { %v375_v0 = vadd.f32 %v661_v18, %v361_v20 }
 0x136   :  { %v378_v21 = vpop.permute.xlu1 %377  ;;  %v389_v26 = vadd.f32 %v663_v22, %v375_v0 }
 0x137   :  { %vm382_vm15 = vcmp.eq.s32.totalorder %v378_v21, %v1130_v38 }
 0x138   :  { %v662_v24 = vsel %vm382_vm15, 1.0, %v1009_v49 }
 0x139   :  { %v388_v25 = vadd.f32 %v662_v24, %v374_v23 }
 0x13b   :  { %734 = vmatprep.mubr.f32.mxu0 %v388_v25  ;;  %v493_v33 = vpop.permute.xlu1 %492 }
 0x13c   :  { %735 = vmatmul.mubr.f32.vlgmr.msra.gmra.mrb[0].mxu0 %v389_v26  ;;  %vm497_vm0 = vcmp.eq.s32.totalorder %v493_v33, %v1130_v38 }
 0x13d   :  { %v664_v43 = vsel %vm497_vm0, 1.0, %v1009_v49 }
 0x13f   :  { %v496_v35 = vpop.permute.xlu1 %495 }
 0x140   :  { %vm498_vm2 = vcmp.eq.s32.totalorder %v496_v35, %v1130_v38 }
 0x141   :  { %v665_v44 = vsel %vm498_vm2, 1.0, %v1009_v49 }
 0x20f   :  { %v736_v36 = vpop.f32.mrb[0].mxu0 }
 0x210   :  { %vm483_vm1 = vcmp.gt.f32.partialorder %v736_v36, 0.0  ;;  %v472_v37 = vpop.f32.mrb[1].mxu0  ;;  %v486_v39 = vmul.f32 %v736_v36, %v484_v34 }
 0x211   :  { %vm482_vm3 = vcmp.gt.f32.partialorder %v472_v37, 0.0  ;;  %v485_v40 = vmul.f32 %v484_v34, %v472_v37 }
 0x212   :  { %v488_v41 = vsel %vm483_vm1, %v736_v36, %v486_v39 }
 0x213   :  { %v487_v42 = vsel %vm482_vm3, %v472_v37, %v485_v40  ;;  %v504_v46 = vadd.f32 %v665_v44, %v488_v41 }
 0x214   :  { %v503_v45 = vadd.f32 %v664_v43, %v487_v42 }
 0x216   :  { %769 = vmatprep.mubr.f32.mxu1 %v503_v45 }
 0x217   :  { %770 = vmatmul.mubr.f32.vlgmr.msra.gmra.mrb[0].mxu1 %v504_v46 }
 0x2ea   :  { %v771_v47 = vpop.f32.mrb[0].mxu1 }
 0x2eb   :  { %597 = vst [vmem:[#allocation8 + $0x8] sm:$0xff] %v771_v47  ;;  %v587_v48 = vpop.f32.mrb[1].mxu1 }
 0x2ec   :  { %596 = vst [vmem:[#allocation8] sm:$0xff] %v587_v48 }
 0x2ed   :  { %964 = shalt.err (!%p961_p6)
}
 0x2ee   :  { %s965_s6 = scalar_lea.hbm %s1292_s5, 256 }
 0x2ef   :  { %p966_p7 = scmp.ne.s32.totalorder %s1292_s5, %s965_s6  ;;  %p969_p8 = scmp.lt.u32.totalorder %s965_s6, %s1292_s5 }
 0x2f1   :  { %p971_p9 = pnand %p969_p8, %p966_p7 }
 0x2f3   :  { %974 = shalt.err (!%p971_p9)
}
 0x2f4   :  { %609 = dma.vmem_to_hbm [thread:$0]  %s604_s25, 256, %s1292_s5, [#allocation5], %s982_s28, %s982_s28, %s983_s29  }
 0x2f5   :  { %979 = dma.done.wait [#allocation5], 256  }
 0x2f6   :  { %980 = vsyncadd [#allocation5], 4294967040 }
 0x2f7   :  { %613 = vsyncpa [#allocation4], 1 }
 0x2f8   :  { %614 = vsyncpa [#allocation7], 1 }
 0x2f9   :  { %615 = vsyncpa [#allocation5], 1 }

</bundles_post_ra>
